<compile_context>
chip_gen: v7x
topology: tpu7x:2x2x1
jax: 0.10.0
libtpu: 0.0.40
codegen_flags: <defaults>
</compile_context>

<pallas_src>
import jax
import jax.numpy as jnp
from jax import lax
from jax.experimental import pallas as pl
from jax.experimental.pallas import tpu as pltpu

EPS = 1e-5
KH = KW = 3
POOL = 2


def convblock_kernel(lhs_ref, w_ref, g_ref, beta_ref, o_ref):
    # lhs_ref : (R, KPAD)    im2col patches, rows ordered (dh, dw, n, h2, w2), K zero-padded
    # w_ref   : (KPAD, Cout) conv weights, taps folded into K (zero-padded rows)
    # g_ref   : (1, Cout)    batch-norm gamma
    # beta_ref: (1, Cout)    batch-norm beta
    # o_ref   : (R//4, Cout) pooled output, rows ordered (n, h2, w2)
    acc = jnp.dot(lhs_ref[...], w_ref[...],
                  preferred_element_type=jnp.float32)        # (R, Cout), one MXU pass

    # --- BatchNorm2d, training mode (batch stats, biased variance), single pass ---
    r = acc.shape[0]
    inv_r = 1.0 / r
    s = jnp.sum(acc, axis=0, keepdims=True)                   # (1, Cout)
    ss = jnp.sum(acc * acc, axis=0, keepdims=True)             # (1, Cout)
    mean = s * inv_r
    var = ss * inv_r - mean * mean
    scale = g_ref[...] * lax.rsqrt(var + EPS)                  # (1, Cout)
    shift = beta_ref[...] - mean * scale                       # conv bias cancelled by mean

    # --- affine + ReLU (VPU) ---
    y = jnp.maximum(acc * scale + shift, 0.0)                  # (R, Cout)

    # --- MaxPool2d 2x2 stride 2: rows are pool-window-major, so the 4 window taps are
    #     4 contiguous row blocks with identical (n, h2, w2) ordering -> 3 VPU maxes.
    q = r // (POOL * POOL)
    yp = jnp.maximum(jnp.maximum(y[0:q], y[q:2 * q]),
                     jnp.maximum(y[2 * q:3 * q], y[3 * q:4 * q]))
    o_ref[...] = yp.astype(o_ref.dtype)


@jax.jit
def conv_block_forward(x_nchw, w_hwio, b, gamma, beta):
    """x_nchw: (N, Cin, H, W) float32. Returns (N, Cout, H//2, W//2) float32.

    b (conv bias) is accepted for API parity with nn.Conv2d but is mathematically
    absorbed by the BatchNorm batch-mean subtraction, so it is not passed to the kernel.
    """
    N, Cin, H, W = x_nchw.shape
    Cout = w_hwio.shape[-1]
    H2, W2 = H // POOL, W // POOL
    K = KH * KW * Cin
    KPAD = 128  # lane-dense contraction dim

    # NCHW -> NHWC, zero pad 1 on each spatial side ('same' padding for 3x3).
    x_nhwc = jnp.transpose(x_nchw, (0, 2, 3, 1))
    x_pad = jnp.pad(x_nhwc, ((0, 0), (1, 1), (1, 1), (0, 0)))

    # im2col: concatenate the 9 shifted taps along channels -> (N, H, W, K), tap-major (kh,kw,cin).
    taps = [x_pad[:, kh:kh + H, kw:kw + W, :]
            for kh in range(KH) for kw in range(KW)]
    patches = jnp.concatenate(taps, axis=-1)

    # Reorder rows pool-window-major: (dh, dw, n, h2, w2) so the kernel pools with static slices.
    patches = patches.reshape(N, H2, POOL, W2, POOL, K)
    patches = jnp.transpose(patches, (2, 4, 0, 1, 3, 5))       # (dh, dw, N, H2, W2, K)
    lhs = patches.reshape(POOL * POOL * N * H2 * W2, K)
    lhs = jnp.pad(lhs, ((0, 0), (0, KPAD - K)))                # (R, 128) lane-dense LHS

    w_mat = w_hwio.reshape(K, Cout)                            # (kh,kw,cin) ordering matches taps
    w_pad = jnp.pad(w_mat, ((0, KPAD - K), (0, 0)))            # (128, Cout)

    out2d = pl.pallas_call(
        convblock_kernel,
        out_shape=jax.ShapeDtypeStruct((N * H2 * W2, Cout), jnp.float32),
        in_specs=[pl.BlockSpec(memory_space=pltpu.MemorySpace.VMEM)] * 4,
        out_specs=pl.BlockSpec(memory_space=pltpu.MemorySpace.VMEM),
    )(lhs, w_pad, gamma.reshape(1, Cout), beta.reshape(1, Cout))

    # (N*H2*W2, Cout) -> NHWC -> NCHW to match the PyTorch output convention.
    return jnp.transpose(out2d.reshape(N, H2, W2, Cout), (0, 3, 1, 2))


def reference_forward(x_nchw, w_hwio, b, gamma, beta):
    """Pure-JAX reference mirroring the PyTorch ConvBlock forward (training-mode BN)."""
    x = jnp.transpose(x_nchw, (0, 2, 3, 1))
    y = lax.conv_general_dilated(
        x, w_hwio, window_strides=(1, 1), padding="SAME",
        dimension_numbers=("NHWC", "HWIO", "NHWC"))
    y = y + b
    mean = jnp.mean(y, axis=(0, 1, 2))
    var = jnp.mean((y - mean) ** 2, axis=(0, 1, 2))  # biased, as PyTorch BN (training)
    y = (y - mean) * lax.rsqrt(var + EPS) * gamma + beta
    y = jnp.maximum(y, 0.0)
    y = lax.reduce_window(y, -jnp.inf, lax.max,
                          (1, POOL, POOL, 1), (1, POOL, POOL, 1), "VALID")
    return jnp.transpose(y, (0, 3, 1, 2))


if __name__ == "__main__":
    key = jax.random.PRNGKey(0)
    k_x, k_w, k_b, k_g, k_be = jax.random.split(key, 5)

    # Module shapes: in_channels=4, out_channels=64, conv 3x3 'same', pool 2x2.
    N, Cin, H, W = 2, 4, 16, 16
    Cout = 64

    x = jax.random.normal(k_x, (N, Cin, H, W), jnp.float32)

    fan_in = Cin * KH * KW
    bound = 1.0 / jnp.sqrt(fan_in)
    w_hwio = jax.random.uniform(k_w, (KH, KW, Cin, Cout), jnp.float32,
                                -bound, bound)
    b = jax.random.uniform(k_b, (Cout,), jnp.float32, -bound, bound)
    gamma = 1.0 + 0.1 * jax.random.normal(k_g, (Cout,), jnp.float32)
    beta = 0.1 * jax.random.normal(k_be, (Cout,), jnp.float32)

    out = conv_block_forward(x, w_hwio, b, gamma, beta)
    out = jax.block_until_ready(out)
    assert out.shape == (N, Cout, H // POOL, W // POOL), out.shape

    ref = jax.block_until_ready(reference_forward(x, w_hwio, b, gamma, beta))
    # Tolerance reflects default MXU precision (bf16 passes, f32 accumulation) vs XLA conv.
    max_err = float(jnp.max(jnp.abs(out - ref)))
    assert jnp.allclose(out, ref, rtol=2e-2, atol=2e-2), max_err

    print("KERNEL_OK")
</pallas_src>

<mosaic_0001>
module attributes {stable_mosaic.version = 11 : i64} {
  func.func @convblock_kernel(%arg0: memref<512x128xf32, #tpu.memory_space<vmem>>, %arg1: memref<128x64xf32, #tpu.memory_space<vmem>>, %arg2: memref<1x64xf32, #tpu.memory_space<vmem>>, %arg3: memref<1x64xf32, #tpu.memory_space<vmem>>, %arg4: memref<128x64xf32, #tpu.memory_space<vmem>>) attributes {dimension_semantics = [], scalar_prefetch = 0 : i64, scratch_operands = 0 : i64, tpu.core_type = #tpu.core_type<tc>} {
    %c0 = arith.constant 0 : index
    %c0_0 = arith.constant 0 : index
    %0 = vector.load %arg0[%c0, %c0_0] : memref<512x128xf32, #tpu.memory_space<vmem>>, vector<512x128xf32>
    %c0_1 = arith.constant 0 : index
    %c0_2 = arith.constant 0 : index
    %1 = vector.load %arg1[%c0_1, %c0_2] : memref<128x64xf32, #tpu.memory_space<vmem>>, vector<128x64xf32>
    %cst = arith.constant dense<0.000000e+00> : vector<512x64xf32>
    %2 = tpu.matmul %0, %1, %cst {dimension_numbers = #tpu.dot_dimension_numbers<[1], [0], [0], [1], [0, 0, 1, 1], [], []>} : vector<512x128xf32>, vector<128x64xf32>, vector<512x64xf32> -> vector<512x64xf32>
    %cst_3 = arith.constant dense<0.000000e+00> : vector<64xf32>
    %3 = vector.multi_reduction <add>, %2, %cst_3 [0] : vector<512x64xf32> to vector<64xf32>
    %4 = vector.shape_cast %3 : vector<64xf32> to vector<1x64xf32>
    %5 = arith.mulf %2, %2 : vector<512x64xf32>
    %cst_4 = arith.constant dense<0.000000e+00> : vector<64xf32>
    %6 = vector.multi_reduction <add>, %5, %cst_4 [0] : vector<512x64xf32> to vector<64xf32>
    %7 = vector.shape_cast %6 : vector<64xf32> to vector<1x64xf32>
    %cst_5 = arith.constant 0.001953125 : f32
    %8 = vector.broadcast %cst_5 : f32 to vector<1x64xf32>
    %9 = arith.mulf %4, %8 : vector<1x64xf32>
    %cst_6 = arith.constant 0.001953125 : f32
    %10 = vector.broadcast %cst_6 : f32 to vector<1x64xf32>
    %11 = arith.mulf %7, %10 : vector<1x64xf32>
    %12 = arith.mulf %9, %9 : vector<1x64xf32>
    %13 = arith.subf %11, %12 : vector<1x64xf32>
    %c0_7 = arith.constant 0 : index
    %c0_8 = arith.constant 0 : index
    %14 = vector.load %arg2[%c0_7, %c0_8] : memref<1x64xf32, #tpu.memory_space<vmem>>, vector<1x64xf32>
    %cst_9 = arith.constant 9.99999974E-6 : f32
    %15 = vector.broadcast %cst_9 : f32 to vector<1x64xf32>
    %16 = arith.addf %13, %15 : vector<1x64xf32>
    %17 = math.rsqrt %16 : vector<1x64xf32>
    %18 = arith.mulf %14, %17 : vector<1x64xf32>
    %c0_10 = arith.constant 0 : index
    %c0_11 = arith.constant 0 : index
    %19 = vector.load %arg3[%c0_10, %c0_11] : memref<1x64xf32, #tpu.memory_space<vmem>>, vector<1x64xf32>
    %20 = arith.mulf %9, %18 : vector<1x64xf32>
    %21 = arith.subf %19, %20 : vector<1x64xf32>
    %22 = vector.broadcast %18 : vector<1x64xf32> to vector<512x64xf32>
    %23 = arith.mulf %2, %22 : vector<512x64xf32>
    %24 = vector.broadcast %21 : vector<1x64xf32> to vector<512x64xf32>
    %25 = arith.addf %23, %24 : vector<512x64xf32>
    %cst_12 = arith.constant 0.000000e+00 : f32
    %26 = vector.broadcast %cst_12 : f32 to vector<512x64xf32>
    %27 = arith.maximumf %25, %26 : vector<512x64xf32>
    %28 = vector.extract_strided_slice %27 {offsets = [0, 0], sizes = [128, 64], strides = [1, 1]} : vector<512x64xf32> to vector<128x64xf32>
    %29 = vector.extract_strided_slice %27 {offsets = [128, 0], sizes = [128, 64], strides = [1, 1]} : vector<512x64xf32> to vector<128x64xf32>
    %30 = arith.maximumf %28, %29 : vector<128x64xf32>
    %31 = vector.extract_strided_slice %27 {offsets = [256, 0], sizes = [128, 64], strides = [1, 1]} : vector<512x64xf32> to vector<128x64xf32>
    %32 = vector.extract_strided_slice %27 {offsets = [384, 0], sizes = [128, 64], strides = [1, 1]} : vector<512x64xf32> to vector<128x64xf32>
    %33 = arith.maximumf %31, %32 : vector<128x64xf32>
    %34 = arith.maximumf %30, %33 : vector<128x64xf32>
    %c0_13 = arith.constant 0 : index
    %c0_14 = arith.constant 0 : index
    %35 = vector.load %arg4[%c0_13, %c0_14] : memref<128x64xf32, #tpu.memory_space<vmem>>, vector<128x64xf32>
    tpu.vector_store %arg4[%c0_13, %c0_14], %34 {strides = array<i32>} : memref<128x64xf32, #tpu.memory_space<vmem>>, vector<128x64xf32>,
    return
  }
}

</mosaic_0001>

<bundles_post_ra>
// kernel: conv_block_forward.1
= control target key start
LH: loop header
LB: loop body
LE: loop exit
PB: predicated region body
PF: predicated region fallthrough
CT: control target
= control target key end

     0   :  { %s2581_s0 = inlined_call_operand.vmem [shape: f32[512,128], index: 0, kind: input, shape index: {}]   ;;  %s2582_s1 = inlined_call_operand.vmem [shape: f32[128,64], index: 1, kind: input, shape index: {}]   ;;  %s2583_s2 = inlined_call_operand.vmem [shape: f32[1,64], index: 2, kind: input, shape index: {}]   ;;  %s2584_s3 = inlined_call_operand.vmem [shape: f32[1,64], index: 3, kind: input, shape index: {}]   ;;  %s2585_s4 = inlined_call_operand.hbm [shape: f32[128,64], index: 4, kind: output, shape index: {}]  }
   0x1   :  { %v82_v0 = vld [vmem:[%s2582_s1] sm:$0xff]  ;;  %v83_v1 = vld [vmem:[%s2582_s1 + $0x8] sm:$0xff]  ;;  %v84_v2 = vld [vmem:[%s2582_s1 + $0x10] sm:$0xff] }
   0x2   :  { %v1317_v3 = vpack.c.bf16 %v83_v1, %v82_v0  ;;  %v85_v4 = vld [vmem:[%s2582_s1 + $0x18] sm:$0xff]  ;;  %v86_v6 = vld [vmem:[%s2582_s1 + $0x20] sm:$0xff]  ;;  %v87_v7 = vld [vmem:[%s2582_s1 + $0x28] sm:$0xff] }
   0x3   :  { %v1321_v5 = vpack.c.bf16 %v85_v4, %v84_v2  ;;  %v1325_v8 = vpack.c.bf16 %v87_v7, %v86_v6  ;;  %v18_v9 = vld [vmem:[%s2581_s0] sm:$0xff]  ;;  %v88_v10 = vld [vmem:[%s2582_s1 + $0x30] sm:$0xff]  ;;  %v89_v11 = vld [vmem:[%s2582_s1 + $0x38] sm:$0xff] }
   0x4   :  { %1318 = vmatprep.subr.bf16.mxu0 %v1317_v3  ;;  %1349 = vmatprep.subr.bf16.mxu1 %v1317_v3  ;;  %v1329_v12 = vpack.c.bf16 %v89_v11, %v88_v10  ;;  %v90_v13 = vld [vmem:[%s2582_s1 + $0x40] sm:$0xff]  ;;  %v91_v14 = vld [vmem:[%s2582_s1 + $0x48] sm:$0xff]  ;;  %v92_v16 = vld [vmem:[%s2582_s1 + $0x50] sm:$0xff] }
   0x5   :  { %1320 = vmatpush3.bf16.msra.mxu0 %v1317_v3  ;;  %1357 = vmatpush3.bf16.msra.mxu1 %v1317_v3  ;;  %v1333_v15 = vpack.c.bf16 %v91_v14, %v90_v13  ;;  %v93_v17 = vld [vmem:[%s2582_s1 + $0x58] sm:$0xff]  ;;  %v50_v18 = vld [vmem:[%s2581_s0 + $0x100] sm:$0xff]  ;;  %v95_v21 = vld [vmem:[%s2582_s1 + $0x68] sm:$0xff] }
   0x6   :  { %1322 = vmatprep.subr.bf16.mxu0 %v1321_v5  ;;  %1350 = vmatprep.subr.bf16.mxu1 %v1321_v5  ;;  %v1337_v19 = vpack.c.bf16 %v93_v17, %v92_v16  ;;  %v94_v20 = vld [vmem:[%s2582_s1 + $0x60] sm:$0xff]  ;;  %v96_v23 = vld [vmem:[%s2582_s1 + $0x70] sm:$0xff]  ;;  %v97_v24 = vld [vmem:[%s2582_s1 + $0x78] sm:$0xff] }
   0x7   :  { %1221 = vmatprep.mubr.f32.mxu0 %v18_v9  ;;  %1269 = vmatprep.mubr.f32.mxu1 %v50_v18  ;;  %v1341_v22 = vpack.c.bf16 %v95_v21, %v94_v20  ;;  %v1345_v25 = vpack.c.bf16 %v97_v24, %v96_v23 }
   0x9   :  { %1324 = vmatpush3.bf16.msra.mxu0 %v1321_v5  ;;  %1358 = vmatpush3.bf16.msra.mxu1 %v1321_v5 }
   0xa   :  { %1326 = vmatprep.subr.bf16.mxu0 %v1325_v8  ;;  %1351 = vmatprep.subr.bf16.mxu1 %v1325_v8 }
   0xd   :  { %1328 = vmatpush3.bf16.msra.mxu0 %v1325_v8  ;;  %1359 = vmatpush3.bf16.msra.mxu1 %v1325_v8 }
   0xe   :  { %1330 = vmatprep.subr.bf16.mxu0 %v1329_v12  ;;  %1352 = vmatprep.subr.bf16.mxu1 %v1329_v12 }
  0x11   :  { %1332 = vmatpush3.bf16.msra.mxu0 %v1329_v12  ;;  %1360 = vmatpush3.bf16.msra.mxu1 %v1329_v12 }
  0x12   :  { %1334 = vmatprep.subr.bf16.mxu0 %v1333_v15  ;;  %1353 = vmatprep.subr.bf16.mxu1 %v1333_v15 }
  0x15   :  { %1336 = vmatpush3.bf16.msra.mxu0 %v1333_v15  ;;  %1361 = vmatpush3.bf16.msra.mxu1 %v1333_v15 }
  0x16   :  { %1338 = vmatprep.subr.bf16.mxu0 %v1337_v19  ;;  %1354 = vmatprep.subr.bf16.mxu1 %v1337_v19 }
  0x19   :  { %1340 = vmatpush3.bf16.msra.mxu0 %v1337_v19  ;;  %1362 = vmatpush3.bf16.msra.mxu1 %v1337_v19 }
  0x1a   :  { %1342 = vmatprep.subr.bf16.mxu0 %v1341_v22  ;;  %1355 = vmatprep.subr.bf16.mxu1 %v1341_v22 }
  0x1b   :  { %9 = vsyncpa [#allocation3], 0  ;;  %v19_v26 = vld [vmem:[%s2581_s0 + $0x8] sm:$0xff]  ;;  %v20_v28 = vld [vmem:[%s2581_s0 + $0x10] sm:$0xff]  ;;  %vm483_vm0 = vcmask 523264  }
  0x1c   :  { %v51_v27 = vld [vmem:[%s2581_s0 + $0x108] sm:$0xff]  ;;  %v52_v29 = vld [vmem:[%s2581_s0 + $0x110] sm:$0xff]  ;;  %v21_v30 = vld [vmem:[%s2581_s0 + $0x18] sm:$0xff] }
  0x1d   :  { %1344 = vmatpush3.bf16.msra.mxu0 %v1341_v22  ;;  %1363 = vmatpush3.bf16.msra.mxu1 %v1341_v22  ;;  %v53_v31 = vld [vmem:[%s2581_s0 + $0x118] sm:$0xff]  ;;  %v22_v32 = vld [vmem:[%s2581_s0 + $0x20] sm:$0xff]  ;;  %v23_v34 = vld [vmem:[%s2581_s0 + $0x28] sm:$0xff] }
  0x1e   :  { %1346 = vmatprep.subr.bf16.mxu0 %v1345_v25  ;;  %1356 = vmatprep.subr.bf16.mxu1 %v1345_v25  ;;  %v54_v33 = vld [vmem:[%s2581_s0 + $0x120] sm:$0xff]  ;;  %v55_v35 = vld [vmem:[%s2581_s0 + $0x128] sm:$0xff]  ;;  %v24_v36 = vld [vmem:[%s2581_s0 + $0x30] sm:$0xff] }
  0x1f   :  { %v56_v37 = vld [vmem:[%s2581_s0 + $0x130] sm:$0xff]  ;;  %v25_v38 = vld [vmem:[%s2581_s0 + $0x38] sm:$0xff]  ;;  %v26_v40 = vld [vmem:[%s2581_s0 + $0x40] sm:$0xff] }
  0x20   :  { %v57_v39 = vld [vmem:[%s2581_s0 + $0x138] sm:$0xff]  ;;  %v58_v41 = vld [vmem:[%s2581_s0 + $0x140] sm:$0xff]  ;;  %v27_v42 = vld [vmem:[%s2581_s0 + $0x48] sm:$0xff] }
  0x21   :  { %1348 = vmatpush3.bf16.msra.mxu0 %v1345_v25  ;;  %1364 = vmatpush3.bf16.msra.mxu1 %v1345_v25  ;;  %v59_v43 = vld [vmem:[%s2581_s0 + $0x148] sm:$0xff]  ;;  %v28_v44 = vld [vmem:[%s2581_s0 + $0x50] sm:$0xff]  ;;  %v29_v46 = vld [vmem:[%s2581_s0 + $0x58] sm:$0xff] }
  0x22   :  { %v60_v45 = vld [vmem:[%s2581_s0 + $0x150] sm:$0xff]  ;;  %v61_v47 = vld [vmem:[%s2581_s0 + $0x158] sm:$0xff]  ;;  %v30_v48 = vld [vmem:[%s2581_s0 + $0x60] sm:$0xff] }
  0x23   :  { %v62_v49 = vld [vmem:[%s2581_s0 + $0x160] sm:$0xff]  ;;  %v31_v50 = vld [vmem:[%s2581_s0 + $0x68] sm:$0xff]  ;;  %v32_v52 = vld [vmem:[%s2581_s0 + $0x70] sm:$0xff] }
  0x24   :  { %1222 = vmatmul.mubr.f32.vlgmr.msra.gmra.mrb[0].mxu0 %v19_v26  ;;  %1270 = vmatmul.mubr.f32.vlgmr.msra.gmra.mrb[0].mxu1 %v51_v27  ;;  %v63_v51 = vld [vmem:[%s2581_s0 + $0x168] sm:$0xff]  ;;  %v64_v53 = vld [vmem:[%s2581_s0 + $0x170] sm:$0xff]  ;;  %v33_v54 = vld [vmem:[%s2581_s0 + $0x78] sm:$0xff] }
  0x25   :  { %1224 = vmatprep.mubr.f32.mxu0 %v20_v28  ;;  %1272 = vmatprep.mubr.f32.mxu1 %v52_v29  ;;  %v65_v55 = vld [vmem:[%s2581_s0 + $0x178] sm:$0xff]  ;;  %v34_v56 = vld [vmem:[%s2581_s0 + $0x80] sm:$0xff]  ;;  %v35_v58 = vld [vmem:[%s2581_s0 + $0x88] sm:$0xff] }
  0x26   :  { %v66_v57 = vld [vmem:[%s2581_s0 + $0x180] sm:$0xff]  ;;  %v67_v59 = vld [vmem:[%s2581_s0 + $0x188] sm:$0xff]  ;;  %v36_v60 = vld [vmem:[%s2581_s0 + $0x90] sm:$0xff] }
  0x27   :  { %v68_v61 = vld [vmem:[%s2581_s0 + $0x190] sm:$0xff]  ;;  %v37_v62 = vld [vmem:[%s2581_s0 + $0x98] sm:$0xff]  ;;  %v38_v0 = vld [vmem:[%s2581_s0 + $0xa0] sm:$0xff] }
  0x28   :  { %1225 = vmatmul.mubr.f32.gmra.mrb[2].mxu0 %v21_v30  ;;  %1273 = vmatmul.mubr.f32.gmra.mrb[2].mxu1 %v53_v31  ;;  %v69_v63 = vld [vmem:[%s2581_s0 + $0x198] sm:$0xff]  ;;  %v70_v1 = vld [vmem:[%s2581_s0 + $0x1a0] sm:$0xff]  ;;  %v39_v2 = vld [vmem:[%s2581_s0 + $0xa8] sm:$0xff] }
  0x29   :  { %1227 = vmatprep.mubr.f32.mxu0 %v22_v32  ;;  %1275 = vmatprep.mubr.f32.mxu1 %v54_v33  ;;  %v71_v3 = vld [vmem:[%s2581_s0 + $0x1a8] sm:$0xff]  ;;  %v40_v4 = vld [vmem:[%s2581_s0 + $0xb0] sm:$0xff]  ;;  %v41_v6 = vld [vmem:[%s2581_s0 + $0xb8] sm:$0xff] }
  0x2a   :  { %v72_v5 = vld [vmem:[%s2581_s0 + $0x1b0] sm:$0xff]  ;;  %v73_v7 = vld [vmem:[%s2581_s0 + $0x1b8] sm:$0xff]  ;;  %v42_v8 = vld [vmem:[%s2581_s0 + $0xc0] sm:$0xff] }
  0x2b   :  { %v74_v9 = vld [vmem:[%s2581_s0 + $0x1c0] sm:$0xff]  ;;  %v43_v10 = vld [vmem:[%s2581_s0 + $0xc8] sm:$0xff]  ;;  %v44_v12 = vld [vmem:[%s2581_s0 + $0xd0] sm:$0xff] }
  0x2c   :  { %1228 = vmatmul.mubr.f32.gmra.mrb[4].mxu0 %v23_v34  ;;  %1276 = vmatmul.mubr.f32.gmra.mrb[4].mxu1 %v55_v35  ;;  %v75_v11 = vld [vmem:[%s2581_s0 + $0x1c8] sm:$0xff]  ;;  %v76_v13 = vld [vmem:[%s2581_s0 + $0x1d0] sm:$0xff]  ;;  %v45_v14 = vld [vmem:[%s2581_s0 + $0xd8] sm:$0xff] }
  0x2d   :  { %1230 = vmatprep.mubr.f32.mxu0 %v24_v36  ;;  %1278 = vmatprep.mubr.f32.mxu1 %v56_v37  ;;  %v77_v15 = vld [vmem:[%s2581_s0 + $0x1d8] sm:$0xff]  ;;  %v46_v16 = vld [vmem:[%s2581_s0 + $0xe0] sm:$0xff]  ;;  %v47_v18 = vld [vmem:[%s2581_s0 + $0xe8] sm:$0xff] }
  0x2e   :  { %v78_v17 = vld [vmem:[%s2581_s0 + $0x1e0] sm:$0xff]  ;;  %v79_v19 = vld [vmem:[%s2581_s0 + $0x1e8] sm:$0xff]  ;;  %v48_v20 = vld [vmem:[%s2581_s0 + $0xf0] sm:$0xff] }
  0x2f   :  { %v80_v21 = vld [vmem:[%s2581_s0 + $0x1f0] sm:$0xff]  ;;  %v49_v22 = vld [vmem:[%s2581_s0 + $0xf8] sm:$0xff] }
  0x30   :  { %1231 = vmatmul.mubr.f32.gmra.mrb[6].mxu0 %v25_v38  ;;  %1279 = vmatmul.mubr.f32.gmra.mrb[6].mxu1 %v57_v39  ;;  %v81_v23 = vld [vmem:[%s2581_s0 + $0x1f8] sm:$0xff] }
  0x31   :  { %1233 = vmatprep.mubr.f32.mxu0 %v26_v40  ;;  %1281 = vmatprep.mubr.f32.mxu1 %v58_v41 }
  0x34   :  { %1234 = vmatmul.mubr.f32.gmra.mrb[8].mxu0 %v27_v42  ;;  %1282 = vmatmul.mubr.f32.gmra.mrb[8].mxu1 %v59_v43 }
  0x35   :  { %1236 = vmatprep.mubr.f32.mxu0 %v28_v44  ;;  %1284 = vmatprep.mubr.f32.mxu1 %v60_v45 }
  0x38   :  { %1237 = vmatmul.mubr.f32.gmra.mrb[10].mxu0 %v29_v46  ;;  %1285 = vmatmul.mubr.f32.gmra.mrb[10].mxu1 %v61_v47 }
  0x39   :  { %1239 = vmatprep.mubr.f32.mxu0 %v30_v48  ;;  %1287 = vmatprep.mubr.f32.mxu1 %v62_v49 }
  0x3c   :  { %1240 = vmatmul.mubr.f32.gmra.mrb[12].mxu0 %v31_v50  ;;  %1288 = vmatmul.mubr.f32.gmra.mrb[12].mxu1 %v63_v51 }
  0x3d   :  { %1242 = vmatprep.mubr.f32.mxu0 %v32_v52  ;;  %1290 = vmatprep.mubr.f32.mxu1 %v64_v53 }
  0x40   :  { %1243 = vmatmul.mubr.f32.gmra.mrb[14].mxu0 %v33_v54  ;;  %1291 = vmatmul.mubr.f32.gmra.mrb[14].mxu1 %v65_v55 }
  0x41   :  { %1245 = vmatprep.mubr.f32.mxu0 %v34_v56  ;;  %1293 = vmatprep.mubr.f32.mxu1 %v66_v57 }
  0x44   :  { %1246 = vmatmul.mubr.f32.gmra.mrb[16].mxu0 %v35_v58  ;;  %1294 = vmatmul.mubr.f32.gmra.mrb[16].mxu1 %v67_v59 }
  0x45   :  { %1248 = vmatprep.mubr.f32.mxu0 %v36_v60  ;;  %1296 = vmatprep.mubr.f32.mxu1 %v68_v61 }
  0x48   :  { %1249 = vmatmul.mubr.f32.gmra.mrb[18].mxu0 %v37_v62  ;;  %1297 = vmatmul.mubr.f32.gmra.mrb[18].mxu1 %v69_v63 }
  0x49   :  { %1251 = vmatprep.mubr.f32.mxu0 %v38_v0  ;;  %1299 = vmatprep.mubr.f32.mxu1 %v70_v1 }
  0x4c   :  { %1252 = vmatmul.mubr.f32.gmra.mrb[20].mxu0 %v39_v2  ;;  %1300 = vmatmul.mubr.f32.gmra.mrb[20].mxu1 %v71_v3 }
  0x4d   :  { %1254 = vmatprep.mubr.f32.mxu0 %v40_v4  ;;  %1302 = vmatprep.mubr.f32.mxu1 %v72_v5 }
  0x50   :  { %1255 = vmatmul.mubr.f32.gmra.mrb[22].mxu0 %v41_v6  ;;  %1303 = vmatmul.mubr.f32.gmra.mrb[22].mxu1 %v73_v7 }
  0x51   :  { %1257 = vmatprep.mubr.f32.mxu0 %v42_v8  ;;  %1305 = vmatprep.mubr.f32.mxu1 %v74_v9 }
  0x54   :  { %1258 = vmatmul.mubr.f32.gmra.mrb[24].mxu0 %v43_v10  ;;  %1306 = vmatmul.mubr.f32.gmra.mrb[24].mxu1 %v75_v11 }
  0x55   :  { %1260 = vmatprep.mubr.f32.mxu0 %v44_v12  ;;  %1308 = vmatprep.mubr.f32.mxu1 %v76_v13 }
  0x58   :  { %1261 = vmatmul.mubr.f32.gmra.mrb[26].mxu0 %v45_v14  ;;  %1309 = vmatmul.mubr.f32.gmra.mrb[26].mxu1 %v77_v15 }
  0x59   :  { %1263 = vmatprep.mubr.f32.mxu0 %v46_v16  ;;  %1311 = vmatprep.mubr.f32.mxu1 %v78_v17 }
  0x5c   :  { %1264 = vmatmul.mubr.f32.gmra.mrb[28].mxu0 %v47_v18  ;;  %1312 = vmatmul.mubr.f32.gmra.mrb[28].mxu1 %v79_v19 }
  0x5d   :  { %1266 = vmatprep.mubr.f32.mxu0 %v48_v20  ;;  %1314 = vmatprep.mubr.f32.mxu1 %v80_v21 }
  0x60   :  { %1267 = vmatmul.mubr.f32.gmra.mrb[30].mxu0 %v49_v22  ;;  %1315 = vmatmul.mubr.f32.gmra.mrb[30].mxu1 %v81_v23 }
  0xf7   :  { %v1662_v24 = vpop.f32.mrb[0].mxu0  ;;  %v1664_v25 = vpop.f32.mrb[0].mxu1 }
  0xf8   :  { %v485_v26 = vsel %vm483_vm0, %v1662_v24, 0.0  ;;  %v618_v27 = vmul.f32 %v1662_v24, %v1662_v24  ;;  %v1670_v28 = vpop.f32.mrb[1].mxu0  ;;  %v1672_v29 = vpop.f32.mrb[1].mxu1 }
  0xf9   :  { %v484_v30 = vsel %vm483_vm0, %v1670_v28, 0.0  ;;  %v617_v31 = vmul.f32 %v1670_v28, %v1670_v28 }
  0xfa   :  { %v682_v32 = vsel %vm483_vm0, %v618_v27, 0.0  ;;  %v486_v33 = vadd.f32 %v485_v26, %v484_v30 }
  0xfb   :  { %v681_v34 = vsel %vm483_vm0, %v617_v31, 0.0  ;;  %v1680_v35 = vpop.f32.mrb[2].mxu0  ;;  %v1682_v36 = vpop.f32.mrb[2].mxu1 }
  0xfc   :  { %v683_v37 = vadd.f32 %v682_v32, %v681_v34  ;;  %v1684_v38 = vpop.f32.mrb[3].mxu0  ;;  %v1686_v39 = vpop.f32.mrb[3].mxu1  ;;  %v620_v40 = vmul.f32 %v1680_v35, %v1680_v35  ;;  %v489_v44 = vsel %vm483_vm0, %v1680_v35, 0.0 }
  0xfd   :  { %v487_v41 = vsel %vm483_vm0, %v1684_v38, 0.0  ;;  %v619_v42 = vmul.f32 %v1684_v38, %v1684_v38 }
  0xfe   :  { %v488_v43 = vadd.f32 %v487_v41, %v486_v33  ;;  %v686_v52 = vsel %vm483_vm0, %v620_v40, 0.0 }
  0xff   :  { %v684_v45 = vsel %vm483_vm0, %v619_v42, 0.0  ;;  %v1697_v46 = vpop.f32.mrb[4].mxu0  ;;  %v1699_v47 = vpop.f32.mrb[4].mxu1 }
 0x100   :  { %v685_v48 = vadd.f32 %v684_v45, %v683_v37  ;;  %v1701_v49 = vpop.f32.mrb[5].mxu0  ;;  %v490_v50 = vadd.f32 %v489_v44, %v488_v43  ;;  %v1703_v51 = vpop.f32.mrb[5].mxu1  ;;  %v622_v53 = vmul.f32 %v1697_v46, %v1697_v46  ;;  %v493_v58 = vsel %vm483_vm0, %v1697_v46, 0.0 }
 0x101   :  { %v491_v54 = vsel %vm483_vm0, %v1701_v49, 0.0  ;;  %v621_v55 = vmul.f32 %v1701_v49, %v1701_v49 }
 0x102   :  { %v492_v56 = vadd.f32 %v491_v54, %v490_v50  ;;  %v687_v57 = vadd.f32 %v686_v52, %v685_v48  ;;  %v690_v2 = vsel %vm483_vm0, %v622_v53, 0.0 }
 0x103   :  { %v688_v59 = vsel %vm483_vm0, %v621_v55, 0.0  ;;  %v1715_v60 = vpop.f32.mrb[6].mxu0  ;;  %v1717_v61 = vpop.f32.mrb[6].mxu1 }
 0x104   :  { %v689_v62 = vadd.f32 %v688_v59, %v687_v57  ;;  %v1719_v63 = vpop.f32.mrb[7].mxu0  ;;  %v494_v0 = vadd.f32 %v493_v58, %v492_v56  ;;  %v1721_v1 = vpop.f32.mrb[7].mxu1  ;;  %v624_v3 = vmul.f32 %v1715_v60, %v1715_v60  ;;  %v497_v8 = vsel %vm483_vm0, %v1715_v60, 0.0 }
 0x105   :  { %v495_v4 = vsel %vm483_vm0, %v1719_v63, 0.0  ;;  %v623_v5 = vmul.f32 %v1719_v63, %v1719_v63 }
 0x106   :  { %v496_v6 = vadd.f32 %v495_v4, %v494_v0  ;;  %v691_v7 = vadd.f32 %v690_v2, %v689_v62  ;;  %v694_v16 = vsel %vm483_vm0, %v624_v3, 0.0 }
 0x107   :  { %v692_v9 = vsel %vm483_vm0, %v623_v5, 0.0  ;;  %v1733_v10 = vpop.f32.mrb[8].mxu0  ;;  %v1735_v11 = vpop.f32.mrb[8].mxu1 }
 0x108   :  { %v693_v12 = vadd.f32 %v692_v9, %v691_v7  ;;  %v1737_v13 = vpop.f32.mrb[9].mxu0  ;;  %v498_v14 = vadd.f32 %v497_v8, %v496_v6  ;;  %v1739_v15 = vpop.f32.mrb[9].mxu1  ;;  %v626_v17 = vmul.f32 %v1733_v10, %v1733_v10  ;;  %v501_v22 = vsel %vm483_vm0, %v1733_v10, 0.0 }
 0x109   :  { %v499_v18 = vsel %vm483_vm0, %v1737_v13, 0.0  ;;  %v625_v19 = vmul.f32 %v1737_v13, %v1737_v13 }
 0x10a   :  { %v500_v20 = vadd.f32 %v499_v18, %v498_v14  ;;  %v695_v21 = vadd.f32 %v694_v16, %v693_v12  ;;  %v698_v34 = vsel %vm483_vm0, %v626_v17, 0.0 }
 0x10b   :  { %v696_v23 = vsel %vm483_vm0, %v625_v19, 0.0  ;;  %v1751_v26 = vpop.f32.mrb[10].mxu0  ;;  %v1753_v27 = vpop.f32.mrb[10].mxu1 }
 0x10c   :  { %v697_v30 = vadd.f32 %v696_v23, %v695_v21  ;;  %v1755_v31 = vpop.f32.mrb[11].mxu0  ;;  %v502_v32 = vadd.f32 %v501_v22, %v500_v20  ;;  %v1757_v33 = vpop.f32.mrb[11].mxu1  ;;  %v628_v37 = vmul.f32 %v1751_v26, %v1751_v26  ;;  %v505_v44 = vsel %vm483_vm0, %v1751_v26, 0.0 }
 0x10d   :  { %v503_v40 = vsel %vm483_vm0, %v1755_v31, 0.0  ;;  %v627_v41 = vmul.f32 %v1755_v31, %v1755_v31 }
 0x10e   :  { %v504_v42 = vadd.f32 %v503_v40, %v502_v32  ;;  %v699_v43 = vadd.f32 %v698_v34, %v697_v30  ;;  %v702_v56 = vsel %vm483_vm0, %v628_v37, 0.0 }
 0x10f   :  { %v700_v45 = vsel %vm483_vm0, %v627_v41, 0.0  ;;  %v1769_v48 = vpop.f32.mrb[12].mxu0  ;;  %v1771_v50 = vpop.f32.mrb[12].mxu1 }
 0x110   :  { %2610 = vst [vmem:[#allocation5_spill] sm:$0xff] %v1769_v48  ;;  %v701_v52 = vadd.f32 %v700_v45, %v699_v43  ;;  %v1773_v53 = vpop.f32.mrb[13].mxu0  ;;  %v506_v54 = vadd.f32 %v505_v44, %v504_v42  ;;  %v1775_v55 = vpop.f32.mrb[13].mxu1  ;;  %v630_v57 = vmul.f32 %v1769_v48, %v1769_v48  ;;  %v509_v2 = vsel %vm483_vm0, %v1769_v48, 0.0 }
 0x111   :  { %2611 = vst [vmem:[#allocation6_spill] sm:$0xff] %v1773_v53  ;;  %v507_v58 = vsel %vm483_vm0, %v1773_v53, 0.0  ;;  %v629_v59 = vmul.f32 %v1773_v53, %v1773_v53  ;;  %v650_v48 = vmul.f32 %v1664_v25, %v1664_v25 }
 0x112   :  { %v508_v62 = vadd.f32 %v507_v58, %v506_v54  ;;  %v703_v0 = vadd.f32 %v702_v56, %v701_v52  ;;  %v706_v12 = vsel %vm483_vm0, %v630_v57, 0.0 }
 0x113   :  { %v704_v3 = vsel %vm483_vm0, %v629_v59, 0.0  ;;  %v1787_v4 = vpop.f32.mrb[14].mxu0  ;;  %v1789_v5 = vpop.f32.mrb[14].mxu1 }
 0x114   :  { %2612 = vst [vmem:[#allocation7_spill] sm:$0xff] %v1787_v4  ;;  %v705_v6 = vadd.f32 %v704_v3, %v703_v0  ;;  %v1791_v7 = vpop.f32.mrb[15].mxu0  ;;  %v510_v8 = vadd.f32 %v509_v2, %v508_v62  ;;  %v1793_v9 = vpop.f32.mrb[15].mxu1  ;;  %v632_v14 = vmul.f32 %v1787_v4, %v1787_v4  ;;  %v513_v20 = vsel %vm483_vm0, %v1787_v4, 0.0 }
 0x115   :  { %v511_v16 = vsel %vm483_vm0, %v1791_v7, 0.0  ;;  %v631_v17 = vmul.f32 %v1791_v7, %v1791_v7 }
 0x116   :  { %v512_v18 = vadd.f32 %v511_v16, %v510_v8  ;;  %v707_v19 = vadd.f32 %v706_v12, %v705_v6  ;;  %v710_v40 = vsel %vm483_vm0, %v632_v14, 0.0 }
 0x117   :  { %v708_v21 = vsel %vm483_vm0, %v631_v17, 0.0  ;;  %v1805_v22 = vpop.f32.mrb[16].mxu0  ;;  %v1807_v23 = vpop.f32.mrb[16].mxu1 }
 0x118   :  { %2613 = vst [vmem:[#allocation8_spill] sm:$0xff] %v1805_v22  ;;  %v709_v30 = vadd.f32 %v708_v21, %v707_v19  ;;  %v1809_v32 = vpop.f32.mrb[17].mxu0  ;;  %v514_v34 = vadd.f32 %v513_v20, %v512_v18  ;;  %v1811_v37 = vpop.f32.mrb[17].mxu1  ;;  %v634_v41 = vmul.f32 %v1805_v22, %v1805_v22  ;;  %v517_v52 = vsel %vm483_vm0, %v1805_v22, 0.0 }
 0x119   :  { %2614 = vst [vmem:[#allocation9_spill] sm:$0xff] %v1809_v32  ;;  %v515_v42 = vsel %vm483_vm0, %v1809_v32, 0.0  ;;  %v633_v43 = vmul.f32 %v1809_v32, %v1809_v32  ;;  %v649_v32 = vmul.f32 %v1672_v29, %v1672_v29 }
 0x11a   :  { %v516_v44 = vadd.f32 %v515_v42, %v514_v34  ;;  %v711_v45 = vadd.f32 %v710_v40, %v709_v30  ;;  %v714_v2 = vsel %vm483_vm0, %v634_v41, 0.0 }
 0x11b   :  { %v712_v54 = vsel %vm483_vm0, %v633_v43, 0.0  ;;  %v1823_v56 = vpop.f32.mrb[18].mxu0  ;;  %v1825_v57 = vpop.f32.mrb[18].mxu1  ;;  %v744_v53 = vsel %vm483_vm0, %v649_v32, 0.0 }
 0x11c   :  { %2615 = vst [vmem:[#allocation10_spill] sm:$0xff] %v1823_v56  ;;  %v713_v58 = vadd.f32 %v712_v54, %v711_v45  ;;  %v1827_v59 = vpop.f32.mrb[19].mxu0  ;;  %v518_v62 = vadd.f32 %v517_v52, %v516_v44  ;;  %v1829_v0 = vpop.f32.mrb[19].mxu1  ;;  %v636_v3 = vmul.f32 %v1823_v56, %v1823_v56  ;;  %v521_v16 = vsel %vm483_vm0, %v1823_v56, 0.0 }
 0x11d   :  { %2616 = vst [vmem:[#allocation11_spill] sm:$0xff] %v1827_v59  ;;  %v519_v6 = vsel %vm483_vm0, %v1827_v59, 0.0  ;;  %v635_v8 = vmul.f32 %v1827_v59, %v1827_v59 }
 0x11e   :  { %v520_v12 = vadd.f32 %v519_v6, %v518_v62  ;;  %v715_v14 = vadd.f32 %v714_v2, %v713_v58  ;;  %v718_v40 = vsel %vm483_vm0, %v636_v3, 0.0 }
 0x11f   :  { %v716_v17 = vsel %vm483_vm0, %v635_v8, 0.0  ;;  %v1841_v18 = vpop.f32.mrb[20].mxu0  ;;  %v1843_v19 = vpop.f32.mrb[20].mxu1 }
 0x120   :  { %2617 = vst [vmem:[#allocation12_spill] sm:$0xff] %v1841_v18  ;;  %v717_v20 = vadd.f32 %v716_v17, %v715_v14  ;;  %v1845_v21 = vpop.f32.mrb[21].mxu0  ;;  %v522_v30 = vadd.f32 %v521_v16, %v520_v12  ;;  %v1847_v34 = vpop.f32.mrb[21].mxu1  ;;  %v638_v41 = vmul.f32 %v1841_v18, %v1841_v18  ;;  %v525_v52 = vsel %vm483_vm0, %v1841_v18, 0.0 }
 0x121   :  { %2618 = vst [vmem:[#allocation13_spill] sm:$0xff] %v1845_v21  ;;  %v523_v42 = vsel %vm483_vm0, %v1845_v21, 0.0  ;;  %v637_v43 = vmul.f32 %v1845_v21, %v1845_v21 }
 0x122   :  { %v524_v44 = vadd.f32 %v523_v42, %v522_v30  ;;  %v719_v45 = vadd.f32 %v718_v40, %v717_v20  ;;  %v722_v12 = vsel %vm483_vm0, %v638_v41, 0.0 }
 0x123   :  { %v720_v54 = vsel %vm483_vm0, %v637_v43, 0.0  ;;  %v1859_v58 = vpop.f32.mrb[22].mxu0  ;;  %v1861_v62 = vpop.f32.mrb[22].mxu1 }
 0x124   :  { %2619 = vst [vmem:[#allocation14_spill] sm:$0xff] %v1859_v58  ;;  %v721_v2 = vadd.f32 %v720_v54, %v719_v45  ;;  %v1863_v3 = vpop.f32.mrb[23].mxu0  ;;  %v526_v6 = vadd.f32 %v525_v52, %v524_v44  ;;  %v1865_v8 = vpop.f32.mrb[23].mxu1  ;;  %v640_v14 = vmul.f32 %v1859_v58, %v1859_v58  ;;  %v529_v40 = vsel %vm483_vm0, %v1859_v58, 0.0 }
 0x125   :  { %2620 = vst [vmem:[#allocation15_spill] sm:$0xff] %v1863_v3  ;;  %v527_v16 = vsel %vm483_vm0, %v1863_v3, 0.0  ;;  %v639_v17 = vmul.f32 %v1863_v3, %v1863_v3 }
 0x126   :  { %v528_v20 = vadd.f32 %v527_v16, %v526_v6  ;;  %v723_v30 = vadd.f32 %v722_v12, %v721_v2  ;;  %v726_v18 = vsel %vm483_vm0, %v640_v14, 0.0 }
 0x127   :  { %v724_v42 = vsel %vm483_vm0, %v639_v17, 0.0  ;;  %v1877_v43 = vpop.f32.mrb[24].mxu0  ;;  %v1879_v44 = vpop.f32.mrb[24].mxu1 }
 0x128   :  { %2621 = vst [vmem:[#allocation16_spill] sm:$0xff] %v1877_v43  ;;  %2622 = vst [vmem:[#allocation17_spill] sm:$0xff] %v1879_v44  ;;  %v725_v41 = vadd.f32 %v724_v42, %v723_v30  ;;  %v1881_v45 = vpop.f32.mrb[25].mxu0  ;;  %v530_v52 = vadd.f32 %v529_v40, %v528_v20  ;;  %v1883_v54 = vpop.f32.mrb[25].mxu1  ;;  %v642_v2 = vmul.f32 %v1877_v43, %v1877_v43  ;;  %v533_v30 = vsel %vm483_vm0, %v1877_v43, 0.0 }
 0x129   :  { %2623 = vst [vmem:[#allocation18_spill] sm:$0xff] %v1881_v45  ;;  %2624 = vst [vmem:[#allocation19_spill] sm:$0xff] %v1883_v54  ;;  %v531_v6 = vsel %vm483_vm0, %v1881_v45, 0.0  ;;  %v641_v12 = vmul.f32 %v1881_v45, %v1881_v45 }
 0x12a   :  { %v532_v16 = vadd.f32 %v531_v6, %v530_v52  ;;  %v727_v17 = vadd.f32 %v726_v18, %v725_v41  ;;  %v730_v56 = vsel %vm483_vm0, %v642_v2, 0.0 }
 0x12b   :  { %v728_v20 = vsel %vm483_vm0, %v641_v12, 0.0  ;;  %v1895_v40 = vpop.f32.mrb[26].mxu0  ;;  %v1897_v42 = vpop.f32.mrb[26].mxu1 }
 0x12c   :  { %2625 = vst [vmem:[#allocation20_spill] sm:$0xff] %v1895_v40  ;;  %2626 = vst [vmem:[#allocation21_spill] sm:$0xff] %v1897_v42  ;;  %v729_v14 = vadd.f32 %v728_v20, %v727_v17  ;;  %v1899_v58 = vpop.f32.mrb[27].mxu0  ;;  %v534_v3 = vadd.f32 %v533_v30, %v532_v16  ;;  %v1901_v21 = vpop.f32.mrb[27].mxu1  ;;  %v644_v18 = vmul.f32 %v1895_v40, %v1895_v40  ;;  %v537_v17 = vsel %vm483_vm0, %v1895_v40, 0.0 }
 0x12d   :  { %2627 = vst [vmem:[#allocation22_spill] sm:$0xff] %v1899_v58  ;;  %2628 = vst [vmem:[#allocation23_spill] sm:$0xff] %v1901_v21  ;;  %v535_v41 = vsel %vm483_vm0, %v1899_v58, 0.0  ;;  %v643_v52 = vmul.f32 %v1899_v58, %v1899_v58 }
 0x12e   :  { %v536_v6 = vadd.f32 %v535_v41, %v534_v3  ;;  %v731_v12 = vadd.f32 %v730_v56, %v729_v14  ;;  %v734_v22 = vsel %vm483_vm0, %v644_v18, 0.0 }
 0x12f   :  { %v732_v16 = vsel %vm483_vm0, %v643_v52, 0.0  ;;  %v1913_v30 = vpop.f32.mrb[28].mxu0  ;;  %v1915_v20 = vpop.f32.mrb[28].mxu1 }
 0x130   :  { %2629 = vst [vmem:[#allocation24_spill] sm:$0xff] %v1913_v30  ;;  %2630 = vst [vmem:[#allocation25_spill] sm:$0xff] %v1915_v20  ;;  %v733_v2 = vadd.f32 %v732_v16, %v731_v12  ;;  %v1917_v43 = vpop.f32.mrb[29].mxu0  ;;  %v538_v45 = vadd.f32 %v537_v17, %v536_v6  ;;  %v1919_v59 = vpop.f32.mrb[29].mxu1  ;;  %v646_v56 = vmul.f32 %v1913_v30, %v1913_v30  ;;  %v541_v12 = vsel %vm483_vm0, %v1913_v30, 0.0 }
 0x131   :  { %2631 = vst [vmem:[#allocation26_spill] sm:$0xff] %v1917_v43  ;;  %2632 = vst [vmem:[#allocation27_spill] sm:$0xff] %v1919_v59  ;;  %v539_v3 = vsel %vm483_vm0, %v1917_v43, 0.0  ;;  %v645_v14 = vmul.f32 %v1917_v43, %v1917_v43 }
 0x132   :  { %v540_v41 = vadd.f32 %v539_v3, %v538_v45  ;;  %v735_v52 = vadd.f32 %v734_v22, %v733_v2  ;;  %v738_v22 = vsel %vm483_vm0, %v646_v56, 0.0 }
 0x133   :  { %v736_v6 = vsel %vm483_vm0, %v645_v14, 0.0  ;;  %v1931_v17 = vpop.f32.mrb[30].mxu0  ;;  %v1933_v16 = vpop.f32.mrb[30].mxu1 }
 0x134   :  { %2633 = vst [vmem:[#allocation28_spill] sm:$0xff] %v1933_v16  ;;  %v737_v18 = vadd.f32 %v736_v6, %v735_v52  ;;  %v1935_v40 = vpop.f32.mrb[31].mxu0  ;;  %v542_v58 = vadd.f32 %v541_v12, %v540_v41  ;;  %v1939_v4 = vpop.f32.mrb[31].mxu1  ;;  %v648_v45 = vmul.f32 %v1931_v17, %v1931_v17  ;;  %v545_v41 = vsel %vm483_vm0, %v1931_v17, 0.0 }
 0x135   :  { %v543_v2 = vsel %vm483_vm0, %v1935_v40, 0.0  ;;  %v647_v3 = vmul.f32 %v1935_v40, %v1935_v40  ;;  %v547_v6 = vsel %vm483_vm0, %v1672_v29, 0.0 }
 0x136   :  { %v544_v14 = vadd.f32 %v543_v2, %v542_v58  ;;  %v739_v52 = vadd.f32 %v738_v22, %v737_v18  ;;  %v742_v43 = vsel %vm483_vm0, %v648_v45, 0.0  ;;  %v651_v58 = vmul.f32 %v1686_v39, %v1686_v39 }
 0x137   :  { %v740_v12 = vsel %vm483_vm0, %v647_v3, 0.0  ;;  %v549_v2 = vsel %vm483_vm0, %v1664_v25, 0.0  ;;  %v551_v3 = vsel %vm483_vm0, %v1686_v39, 0.0  ;;  %v746_v45 = vsel %vm483_vm0, %v650_v48, 0.0 }
 0x138   :  { %v546_v56 = vadd.f32 %v545_v41, %v544_v14  ;;  %v741_v30 = vadd.f32 %v740_v12, %v739_v52  ;;  %v652_v41 = vmul.f32 %v1682_v36, %v1682_v36  ;;  %v748_v32 = vsel %vm483_vm0, %v651_v58, 0.0 }
 0x139   :  { %v653_v12 = vmul.f32 %v1703_v51, %v1703_v51 }
 0x13a   :  { %v743_v18 = vadd.f32 %v742_v43, %v741_v30  ;;  %v548_v22 = vadd.f32 %v547_v6, %v546_v56  ;;  %v553_v6 = vsel %vm483_vm0, %v1682_v36, 0.0  ;;  %v555_v56 = vsel %vm483_vm0, %v1703_v51, 0.0 }
 0x13b   :  { %v750_v48 = vsel %vm483_vm0, %v652_v41, 0.0  ;;  %v752_v58 = vsel %vm483_vm0, %v653_v12, 0.0 }
 0x13c   :  { %v745_v14 = vadd.f32 %v744_v53, %v743_v18  ;;  %v550_v52 = vadd.f32 %v549_v2, %v548_v22  ;;  %v654_v22 = vmul.f32 %v1699_v47, %v1699_v47  ;;  %v655_v2 = vmul.f32 %v1721_v1, %v1721_v1 }
 0x13e   :  { %v552_v43 = vadd.f32 %v551_v3, %v550_v52  ;;  %v747_v30 = vadd.f32 %v746_v45, %v745_v14  ;;  %v557_v52 = vsel %vm483_vm0, %v1699_v47, 0.0  ;;  %v559_v45 = vsel %vm483_vm0, %v1721_v1, 0.0 }
 0x13f   :  { %v754_v41 = vsel %vm483_vm0, %v654_v22, 0.0  ;;  %v756_v12 = vsel %vm483_vm0, %v655_v2, 0.0 }
 0x140   :  { %v749_v53 = vadd.f32 %v748_v32, %v747_v30  ;;  %v554_v18 = vadd.f32 %v553_v6, %v552_v43  ;;  %v656_v30 = vmul.f32 %v1717_v61, %v1717_v61  ;;  %v657_v6 = vmul.f32 %v1739_v15, %v1739_v15 }
 0x142   :  { %v556_v3 = vadd.f32 %v555_v56, %v554_v18  ;;  %v751_v14 = vadd.f32 %v750_v48, %v749_v53  ;;  %v561_v18 = vsel %vm483_vm0, %v1717_v61, 0.0  ;;  %v563_v48 = vsel %vm483_vm0, %v1739_v15, 0.0 }
 0x143   :  { %v758_v22 = vsel %vm483_vm0, %v656_v30, 0.0  ;;  %v760_v2 = vsel %vm483_vm0, %v657_v6, 0.0 }
 0x144   :  { %v753_v32 = vadd.f32 %v752_v58, %v751_v14  ;;  %v558_v43 = vadd.f32 %v557_v52, %v556_v3  ;;  %v658_v14 = vmul.f32 %v1735_v11, %v1735_v11  ;;  %v659_v52 = vmul.f32 %v1757_v33, %v1757_v33 }
 0x146   :  { %v560_v56 = vadd.f32 %v559_v45, %v558_v43  ;;  %v755_v53 = vadd.f32 %v754_v41, %v753_v32  ;;  %v565_v43 = vsel %vm483_vm0, %v1735_v11, 0.0  ;;  %v567_v41 = vsel %vm483_vm0, %v1757_v33, 0.0 }
 0x147   :  { %v762_v30 = vsel %vm483_vm0, %v658_v14, 0.0  ;;  %v764_v6 = vsel %vm483_vm0, %v659_v52, 0.0 }
 0x148   :  { %v757_v58 = vadd.f32 %v756_v12, %v755_v53  ;;  %v562_v3 = vadd.f32 %v561_v18, %v560_v56  ;;  %v660_v53 = vmul.f32 %v1753_v27, %v1753_v27  ;;  %v661_v18 = vmul.f32 %v1775_v55, %v1775_v55 }
 0x14a   :  { %v564_v45 = vadd.f32 %v563_v48, %v562_v3  ;;  %v759_v32 = vadd.f32 %v758_v22, %v757_v58  ;;  %v569_v3 = vsel %vm483_vm0, %v1753_v27, 0.0  ;;  %v571_v22 = vsel %vm483_vm0, %v1775_v55, 0.0 }
 0x14b   :  { %v766_v14 = vsel %vm483_vm0, %v660_v53, 0.0  ;;  %v768_v52 = vsel %vm483_vm0, %v661_v18, 0.0 }
 0x14c   :  { %v761_v12 = vadd.f32 %v760_v2, %v759_v32  ;;  %v566_v56 = vadd.f32 %v565_v43, %v564_v45  ;;  %v662_v32 = vmul.f32 %v1771_v50, %v1771_v50  ;;  %v663_v43 = vmul.f32 %v1793_v9, %v1793_v9 }
 0x14e   :  { %v568_v48 = vadd.f32 %v567_v41, %v566_v56  ;;  %v763_v58 = vadd.f32 %v762_v30, %v761_v12  ;;  %v573_v56 = vsel %vm483_vm0, %v1771_v50, 0.0  ;;  %v575_v30 = vsel %vm483_vm0, %v1793_v9, 0.0 }
 0x14f   :  { %v770_v53 = vsel %vm483_vm0, %v662_v32, 0.0  ;;  %v772_v18 = vsel %vm483_vm0, %v663_v43, 0.0 }
 0x150   :  { %v765_v2 = vadd.f32 %v764_v6, %v763_v58  ;;  %v570_v45 = vadd.f32 %v569_v3, %v568_v48  ;;  %v664_v58 = vmul.f32 %v1789_v5, %v1789_v5  ;;  %v665_v3 = vmul.f32 %v1811_v37, %v1811_v37 }
 0x152   :  { %v572_v41 = vadd.f32 %v571_v22, %v570_v45  ;;  %v767_v12 = vadd.f32 %v766_v14, %v765_v2  ;;  %v577_v45 = vsel %vm483_vm0, %v1789_v5, 0.0  ;;  %v579_v14 = vsel %vm483_vm0, %v1811_v37, 0.0 }
 0x153   :  { %v774_v32 = vsel %vm483_vm0, %v664_v58, 0.0  ;;  %v776_v43 = vsel %vm483_vm0, %v665_v3, 0.0 }
 0x154   :  { %v769_v6 = vadd.f32 %v768_v52, %v767_v12  ;;  %v574_v48 = vadd.f32 %v573_v56, %v572_v41  ;;  %v666_v12 = vmul.f32 %v1807_v23, %v1807_v23  ;;  %v667_v56 = vmul.f32 %v1829_v0, %v1829_v0 }
 0x156   :  { %v576_v22 = vadd.f32 %v575_v30, %v574_v48  ;;  %v771_v2 = vadd.f32 %v770_v53, %v769_v6  ;;  %v581_v48 = vsel %vm483_vm0, %v1807_v23, 0.0  ;;  %v583_v53 = vsel %vm483_vm0, %v1829_v0, 0.0 }
 0x157   :  { %v778_v58 = vsel %vm483_vm0, %v666_v12, 0.0  ;;  %v780_v3 = vsel %vm483_vm0, %v667_v56, 0.0 }
 0x158   :  { %v773_v52 = vadd.f32 %v772_v18, %v771_v2  ;;  %v578_v41 = vadd.f32 %v577_v45, %v576_v22  ;;  %v668_v2 = vmul.f32 %v1825_v57, %v1825_v57  ;;  %v669_v45 = vmul.f32 %v1847_v34, %v1847_v34 }
 0x15a   :  { %v580_v30 = vadd.f32 %v579_v14, %v578_v41  ;;  %v775_v6 = vadd.f32 %v774_v32, %v773_v52  ;;  %v585_v41 = vsel %vm483_vm0, %v1825_v57, 0.0  ;;  %v587_v32 = vsel %vm483_vm0, %v1847_v34, 0.0 }
 0x15b   :  { %v782_v12 = vsel %vm483_vm0, %v668_v2, 0.0  ;;  %v784_v56 = vsel %vm483_vm0, %v669_v45, 0.0 }
 0x15c   :  { %v777_v18 = vadd.f32 %v776_v43, %v775_v6  ;;  %v582_v22 = vadd.f32 %v581_v48, %v580_v30  ;;  %v670_v6 = vmul.f32 %v1843_v19, %v1843_v19  ;;  %v671_v48 = vmul.f32 %v1865_v8, %v1865_v8 }
 0x15e   :  { %v584_v14 = vadd.f32 %v583_v53, %v582_v22  ;;  %v779_v52 = vadd.f32 %v778_v58, %v777_v18  ;;  %v589_v22 = vsel %vm483_vm0, %v1843_v19, 0.0  ;;  %v591_v58 = vsel %vm483_vm0, %v1865_v8, 0.0 }
 0x15f   :  { %v786_v2 = vsel %vm483_vm0, %v670_v6, 0.0  ;;  %v788_v45 = vsel %vm483_vm0, %v671_v48, 0.0 }
 0x160   :  { %v781_v43 = vadd.f32 %v780_v3, %v779_v52  ;;  %v586_v30 = vadd.f32 %v585_v41, %v584_v14  ;;  %v672_v52 = vmul.f32 %v1861_v62, %v1861_v62  ;;  %v673_v41 = vmul.f32 %v1883_v54, %v1883_v54 }
 0x162   :  { %v588_v53 = vadd.f32 %v587_v32, %v586_v30  ;;  %v783_v18 = vadd.f32 %v782_v12, %v781_v43  ;;  %v593_v30 = vsel %vm483_vm0, %v1861_v62, 0.0  ;;  %v595_v12 = vsel %vm483_vm0, %v1883_v54, 0.0 }
 0x163   :  { %v790_v6 = vsel %vm483_vm0, %v672_v52, 0.0  ;;  %v792_v48 = vsel %vm483_vm0, %v673_v41, 0.0 }
 0x164   :  { %v785_v3 = vadd.f32 %v784_v56, %v783_v18  ;;  %v590_v14 = vadd.f32 %v589_v22, %v588_v53  ;;  %v674_v18 = vmul.f32 %v1879_v44, %v1879_v44  ;;  %v675_v22 = vmul.f32 %v1901_v21, %v1901_v21 }
 0x166   :  { %v592_v32 = vadd.f32 %v591_v58, %v590_v14  ;;  %v787_v43 = vadd.f32 %v786_v2, %v785_v3  ;;  %v597_v14 = vsel %vm483_vm0, %v1879_v44, 0.0  ;;  %v599_v2 = vsel %vm483_vm0, %v1901_v21, 0.0 }
 0x167   :  { %v794_v52 = vsel %vm483_vm0, %v674_v18, 0.0  ;;  %v796_v41 = vsel %vm483_vm0, %v675_v22, 0.0 }
 0x168   :  { %v789_v56 = vadd.f32 %v788_v45, %v787_v43  ;;  %v594_v53 = vadd.f32 %v593_v30, %v592_v32  ;;  %v676_v43 = vmul.f32 %v1897_v42, %v1897_v42  ;;  %v677_v30 = vmul.f32 %v1919_v59, %v1919_v59 }
 0x16a   :  { %v596_v58 = vadd.f32 %v595_v12, %v594_v53  ;;  %v791_v3 = vadd.f32 %v790_v6, %v789_v56  ;;  %v601_v53 = vsel %vm483_vm0, %v1897_v42, 0.0  ;;  %v603_v6 = vsel %vm483_vm0, %v1919_v59, 0.0 }
 0x16b   :  { %v798_v18 = vsel %vm483_vm0, %v676_v43, 0.0  ;;  %v800_v22 = vsel %vm483_vm0, %v677_v30, 0.0 }
 0x16c   :  { %v793_v45 = vadd.f32 %v792_v48, %v791_v3  ;;  %v598_v32 = vadd.f32 %v597_v14, %v596_v58  ;;  %v678_v3 = vmul.f32 %v1915_v20, %v1915_v20  ;;  %v679_v14 = vmul.f32 %v1939_v4, %v1939_v4 }
 0x16e   :  { %v600_v12 = vadd.f32 %v599_v2, %v598_v32  ;;  %v795_v56 = vadd.f32 %v794_v52, %v793_v45  ;;  %v605_v32 = vsel %vm483_vm0, %v1915_v20, 0.0  ;;  %v607_v52 = vsel %vm483_vm0, %v1939_v4, 0.0 }
 0x16f   :  { %v802_v43 = vsel %vm483_vm0, %v678_v3, 0.0  ;;  %v804_v30 = vsel %vm483_vm0, %v679_v14, 0.0 }
 0x170   :  { %v797_v48 = vadd.f32 %v796_v41, %v795_v56  ;;  %v602_v58 = vadd.f32 %v601_v53, %v600_v12  ;;  %v680_v56 = vmul.f32 %v1933_v16, %v1933_v16 }
 0x172   :  { %v604_v2 = vadd.f32 %v603_v6, %v602_v58  ;;  %v799_v45 = vadd.f32 %v798_v18, %v797_v48  ;;  %v609_v6 = vsel %vm483_vm0, %v1933_v16, 0.0  ;;  %v806_v18 = vsel %vm483_vm0, %v680_v56, 0.0 }
 0x173   :  { %v826_v56 = vlaneseq }
 0x174   :  { %v801_v41 = vadd.f32 %v800_v22, %v799_v45  ;;  %v606_v12 = vadd.f32 %v605_v32, %v604_v2 }
 0x176   :  { %v608_v53 = vadd.f32 %v607_v52, %v606_v12  ;;  %v803_v59 = vadd.f32 %v802_v43, %v801_v41 }
 0x178   :  { %v610_v48 = vadd.f32 %v609_v6, %v608_v53  ;;  %v805_v58 = vadd.f32 %v804_v30, %v803_v59  ;;  %v827_v30 = vshrl.u32 %v826_v56, 7 }
 0x17a   :  { %v611_v20 = vrot.slane %v610_v48, 4  ;;  %v807_v42 = vadd.f32 %v806_v18, %v805_v58 }
 0x17c   :  { %v612_v22 = vadd.f32 %v611_v20, %v610_v48  ;;  %v808_v2 = vrot.slane %v807_v42, 4  ;;  %v818_v20 = vld [vmem:[%s2583_s2] sm:$0x1]  ;;  %s1394_s2 = smov [#allocation2]  }
 0x17e   :  { %v613_v45 = vrot.slane %v612_v22, 2  ;;  %v809_v3 = vadd.f32 %v808_v2, %v807_v42  ;;  %v828_v42 = vsub.s32 0, %v827_v30  ;;  %v2637_v30 = vld [vmem:[#allocation7_spill] sm:$0xff] }
 0x180   :  { %v614_v32 = vadd.f32 %v613_v45, %v612_v22  ;;  %v810_v21 = vrot.slane %v809_v3, 2 }
 0x182   :  { %v615_v44 = vrot.slane %v614_v32, 1  ;;  %v811_v54 = vadd.f32 %v810_v21, %v809_v3  ;;  %v822_v21 = vld [vmem:[%s2584_s3] sm:$0x1]  ;;  %s1098_s3 = sshll.u32 %s1394_s2, 4  ;;  %s2552_s3 = int_to_ptr.vmem [resolvable:$true] %s1098_s3 }
 0x183   :  { %s1370_s17 = scalar_lea.vmem %s2552_s3, 2048  ;;  %p1375_p1 = scmp.lt.s32.totalorder %s2552_s3, %s2552_s3 }
 0x184   :  { %v616_v14 = vadd.f32 %v615_v44, %v614_v32  ;;  %v812_v52 = vrot.slane %v811_v54, 1  ;;  %p1371_p0 = scmp.ne.s32.totalorder %s2552_s3, %s1370_s17  ;;  %p1376_p2 = scmp.lt.s32.totalorder %s1370_s17, %s1370_s17 }
 0x186   :  { %v813_v41 = vadd.f32 %v812_v52, %v811_v54  ;;  %v814_v12 = vmul.f32 0.001953125, %v616_v14  ;;  %v2634_v52 = vld [vmem:[#allocation6_spill] sm:$0xff]  ;;  %p1377_p3 = por %p1376_p2, %p1375_p1 }
 0x188   :  { %v815_v43 = vmul.f32 0.001953125, %v813_v41  ;;  %v816_v16 = vmul.f32 %v814_v12, %v814_v12  ;;  %v2635_v41 = vld [vmem:[#allocation5_spill] sm:$0xff]  ;;  %p1378_p4 = pnand %p1377_p3, %p1371_p0 }
 0x18a   :  { %v817_v53 = vsub.f32 %v815_v43, %v816_v16 }
 0x18c   :  { %v819_v59 = vadd.f32 1e-05, %v817_v53 }
 0x18e   :  { %1368 = vrsqrt.f32 %v819_v59 }
 0x198   :  { %v1369_v6 = vpop.eup %1368 }
 0x199   :  { %v821_v48 = vmul.f32 %v1369_v6, %v818_v20  ;;  %v2639_v20 = vld [vmem:[#allocation9_spill] sm:$0xff] }
 0x19b   :  { %v823_v44 = vmul.f32 %v821_v48, %v814_v12  ;;  %v2116_v54 = vrot.slane %v821_v48, %v828_v42  ;;  %v2643_v48 = vld [vmem:[#allocation11_spill] sm:$0xff] }
 0x19d   :  { %v824_v58 = vsub.f32 %v822_v21, %v823_v44  ;;  %v845_v16 = vmul.f32 %v2116_v54, %v1791_v7  ;;  %v861_v18 = vmul.f32 %v2116_v54, %v1935_v40  ;;  %v877_v22 = vmul.f32 %v2116_v54, %v1793_v9 }
 0x19e   :  { %v893_v2 = vmul.f32 %v2116_v54, %v1939_v4  ;;  %v2128_v45 = vmul.f32 %v2116_v54, %v1670_v28  ;;  %v2132_v3 = vmul.f32 %v1662_v24, %v2116_v54  ;;  %v2136_v7 = vmul.f32 %v2116_v54, %v1684_v38 }
 0x19f   :  { %v2138_v32 = vrot.slane %v824_v58, %v828_v42  ;;  %v2142_v9 = vmul.f32 %v1680_v35, %v2116_v54  ;;  %v2146_v4 = vmul.f32 %v2116_v54, %v1701_v49  ;;  %v2150_v28 = vmul.f32 %v1697_v46, %v2116_v54  ;;  %v2641_v42 = vld [vmem:[#allocation8_spill] sm:$0xff] }
 0x1a0   :  { %v2154_v24 = vmul.f32 %v2116_v54, %v1719_v63  ;;  %v2158_v38 = vmul.f32 %v1715_v60, %v2116_v54  ;;  %v2162_v35 = vmul.f32 %v2116_v54, %v1737_v13  ;;  %v2166_v49 = vmul.f32 %v1733_v10, %v2116_v54 }
 0x1a1   :  { %v915_v40 = vadd.f32 %v2138_v32, %v845_v16  ;;  %v931_v46 = vadd.f32 %v2138_v32, %v861_v18  ;;  %v947_v14 = vadd.f32 %v2138_v32, %v877_v22  ;;  %v963_v63 = vadd.f32 %v2138_v32, %v893_v2  ;;  %v2645_v16 = vld [vmem:[#allocation10_spill] sm:$0xff]  ;;  %v2646_v22 = vld [vmem:[#allocation13_spill] sm:$0xff] }
 0x1a2   :  { %v2174_v60 = vmul.f32 %v2116_v54, %v1755_v31  ;;  %v2178_v13 = vmul.f32 %v1751_v26, %v2116_v54  ;;  %v2182_v10 = vmul.f32 %v2116_v54, %v2634_v52  ;;  %v2186_v12 = vmul.f32 %v2635_v41, %v2116_v54  ;;  %v2649_v52 = vld [vmem:[#allocation14_spill] sm:$0xff] }
 0x1a3   :  { %v979_v43 = vmax.f32 %v915_v40, 0.0  ;;  %v995_v53 = vmax.f32 %v931_v46, 0.0  ;;  %v1011_v59 = vmax.f32 %v947_v14, 0.0  ;;  %v1027_v56 = vmax.f32 %v963_v63, 0.0  ;;  %v2647_v40 = vld [vmem:[#allocation12_spill] sm:$0xff]  ;;  %v2648_v14 = vld [vmem:[#allocation15_spill] sm:$0xff] }
 0x1a4   :  { %2636 = vst [vmem:[#allocation6_spill] sm:$0xff] %v2186_v12  ;;  %v2190_v31 = vmul.f32 %v2637_v30, %v2116_v54  ;;  %v2194_v26 = vmul.f32 %v2116_v54, %v2639_v20  ;;  %v2198_v6 = vmul.f32 %v2641_v42, %v2116_v54  ;;  %v2202_v21 = vmul.f32 %v2116_v54, %v2643_v48  ;;  %v2650_v30 = vld [vmem:[#allocation18_spill] sm:$0xff]  ;;  %v2653_v48 = vld [vmem:[#allocation20_spill] sm:$0xff] }
 0x1a5   :  { %v1043_v44 = vmax.f32 %v979_v43, %v995_v53  ;;  %v1059_v58 = vmax.f32 %v1011_v59, %v1027_v56  ;;  %v850_v18 = vmul.f32 %v2645_v16, %v2116_v54  ;;  %v851_v2 = vmul.f32 %v2116_v54, %v2646_v22  ;;  %v2651_v53 = vld [vmem:[#allocation16_spill] sm:$0xff]  ;;  %v2652_v56 = vld [vmem:[#allocation22_spill] sm:$0xff] }
 0x1a6   :  { %2638 = vst [vmem:[#allocation5_spill] sm:$0xff] %v2190_v31  ;;  %2640 = vst [vmem:[#allocation7_spill] sm:$0xff] %v2194_v26  ;;  %v852_v46 = vmul.f32 %v2647_v40, %v2116_v54  ;;  %v853_v63 = vmul.f32 %v2116_v54, %v2648_v14  ;;  %v854_v41 = vmul.f32 %v2649_v52, %v2116_v54  ;;  %v2654_v22 = vld [vmem:[#allocation26_spill] sm:$0xff]  ;;  %v2655_v14 = vld [vmem:[#allocation24_spill] sm:$0xff] }
 0x1a7   :  { %2642 = vst [vmem:[#allocation9_spill] sm:$0xff] %v2198_v6  ;;  %2644 = vst [vmem:[#allocation8_spill] sm:$0xff] %v2202_v21  ;;  %v855_v20 = vmul.f32 %v2116_v54, %v2650_v30  ;;  %v1075_v43 = vmax.f32 %v1043_v44, %v1059_v58  ;;  %v856_v59 = vmul.f32 %v2651_v53, %v2116_v54  ;;  %v2660_v26 = vld [vmem:[#allocation27_spill] sm:$0xff] }
 0x1a8   :  { %v857_v42 = vmul.f32 %v2116_v54, %v2652_v56  ;;  %v858_v16 = vmul.f32 %v2653_v48, %v2116_v54  ;;  %v859_v40 = vmul.f32 %v2116_v54, %v2654_v22  ;;  %v860_v21 = vmul.f32 %v2655_v14, %v2116_v54  ;;  %v2656_v48 = vld [vmem:[#allocation19_spill] sm:$0xff] }
 0x1a9   :  { %v862_v52 = vmul.f32 %v1931_v17, %v2116_v54  ;;  %v863_v44 = vmul.f32 %v2116_v54, %v1672_v29  ;;  %1091 = vst.msk [vmem:[#allocation2 + $0x70] sm:$0xff] %vm483_vm0, %v1075_v43  ;;  %v864_v58 = vmul.f32 %v1664_v25, %v2116_v54  ;;  %v865_v30 = vmul.f32 %v2116_v54, %v1686_v39  ;;  %v2658_v14 = vld [vmem:[#allocation23_spill] sm:$0xff] }
 0x1aa   :  { %v866_v53 = vmul.f32 %v1682_v36, %v2116_v54  ;;  %v867_v56 = vmul.f32 %v2116_v54, %v1703_v51  ;;  %v868_v17 = vmul.f32 %v1699_v47, %v2116_v54  ;;  %v869_v29 = vmul.f32 %v2116_v54, %v1721_v1 }
 0x1ab   :  { %v870_v43 = vmul.f32 %v1717_v61, %v2116_v54  ;;  %v871_v25 = vmul.f32 %v2116_v54, %v1739_v15  ;;  %v872_v39 = vmul.f32 %v1735_v11, %v2116_v54  ;;  %v873_v36 = vmul.f32 %v2116_v54, %v1757_v33 }
 0x1ac   :  { %v874_v51 = vmul.f32 %v1753_v27, %v2116_v54  ;;  %v875_v47 = vmul.f32 %v2116_v54, %v1775_v55  ;;  %v876_v1 = vmul.f32 %v1771_v50, %v2116_v54  ;;  %v878_v61 = vmul.f32 %v1789_v5, %v2116_v54 }
 0x1ad   :  { %v879_v15 = vmul.f32 %v2116_v54, %v1811_v37  ;;  %v880_v11 = vmul.f32 %v1807_v23, %v2116_v54  ;;  %v881_v33 = vmul.f32 %v2116_v54, %v1829_v0  ;;  %v882_v27 = vmul.f32 %v1825_v57, %v2116_v54  ;;  %v2657_v0 = vld [vmem:[#allocation17_spill] sm:$0xff] }
 0x1ae   :  { %v883_v55 = vmul.f32 %v2116_v54, %v1847_v34  ;;  %v884_v50 = vmul.f32 %v1843_v19, %v2116_v54  ;;  %v885_v5 = vmul.f32 %v2116_v54, %v1865_v8  ;;  %v886_v37 = vmul.f32 %v1861_v62, %v2116_v54  ;;  %v2659_v34 = vld [vmem:[#allocation21_spill] sm:$0xff]  ;;  %v2662_v62 = vld [vmem:[#allocation28_spill] sm:$0xff] }
 0x1af   :  { %v887_v23 = vmul.f32 %v2116_v54, %v2656_v48  ;;  %v888_v22 = vmul.f32 %v2657_v0, %v2116_v54  ;;  %v889_v57 = vmul.f32 %v2116_v54, %v2658_v14  ;;  %v890_v6 = vmul.f32 %v2659_v34, %v2116_v54  ;;  %v2661_v8 = vld [vmem:[#allocation25_spill] sm:$0xff] }
 0x1b0   :  { %v891_v19 = vmul.f32 %v2116_v54, %v2660_v26  ;;  %v892_v31 = vmul.f32 %v2661_v8, %v2116_v54  ;;  %v894_v12 = vmul.f32 %v2662_v62, %v2116_v54  ;;  %v2291_v48 = vadd.f32 %v2138_v32, %v2128_v45  ;;  %v2667_v8 = vld [vmem:[#allocation5_spill] sm:$0xff]  ;;  %v2668_v62 = vld [vmem:[#allocation7_spill] sm:$0xff] }
 0x1b1   :  { %v2295_v0 = vadd.f32 %v2138_v32, %v2132_v3  ;;  %v2299_v14 = vadd.f32 %v2138_v32, %v2136_v7  ;;  %v2303_v26 = vadd.f32 %v2138_v32, %v2142_v9  ;;  %v2307_v34 = vadd.f32 %v2138_v32, %v2146_v4 }
 0x1b2   :  { %v2311_v54 = vadd.f32 %v2138_v32, %v2150_v28  ;;  %v2315_v45 = vadd.f32 %v2138_v32, %v2154_v24  ;;  %v2319_v3 = vadd.f32 %v2138_v32, %v2158_v38  ;;  %v2323_v7 = vadd.f32 %v2138_v32, %v2162_v35  ;;  %v2666_v38 = vld [vmem:[#allocation6_spill] sm:$0xff] }
 0x1b3   :  { %v2327_v9 = vadd.f32 %v2138_v32, %v2166_v49  ;;  %v2331_v4 = vadd.f32 %v2138_v32, %v2174_v60  ;;  %v2335_v28 = vadd.f32 %v2138_v32, %v2178_v13  ;;  %v2339_v24 = vadd.f32 %v2138_v32, %v2182_v10 }
 0x1b4   :  { %v2343_v35 = vadd.f32 %v2138_v32, %v2666_v38  ;;  %v2347_v49 = vadd.f32 %v2138_v32, %v2667_v8  ;;  %v2351_v60 = vadd.f32 %v2138_v32, %v2668_v62  ;;  %v2365_v38 = vadd.f32 %v2138_v32, %v851_v2 }
 0x1b5   :  { %2663 = vst [vmem:[#allocation11_spill] sm:$0xff] %v2331_v4  ;;  %2664 = vst [vmem:[#allocation10_spill] sm:$0xff] %v2335_v28  ;;  %v2670_v4 = vld [vmem:[#allocation9_spill] sm:$0xff]  ;;  %v2671_v28 = vld [vmem:[#allocation8_spill] sm:$0xff]  ;;  %v2368_v8 = vadd.f32 %v2138_v32, %v852_v46  ;;  %v2371_v62 = vadd.f32 %v2138_v32, %v853_v63  ;;  %v2386_v2 = vadd.f32 %v2138_v32, %v858_v16 }
 0x1b6   :  { %2665 = vst [vmem:[#allocation13_spill] sm:$0xff] %v2339_v24  ;;  %2669 = vst [vmem:[#allocation12_spill] sm:$0xff] %v2351_v60  ;;  %v2355_v13 = vadd.f32 %v2138_v32, %v2670_v4  ;;  %v2359_v10 = vadd.f32 %v2138_v32, %v2671_v28  ;;  %v2362_v24 = vadd.f32 %v2138_v32, %v850_v18 }
 0x1b7   :  { %v2374_v60 = vadd.f32 %v2138_v32, %v854_v41  ;;  %v2377_v4 = vadd.f32 %v2138_v32, %v855_v20  ;;  %v2380_v28 = vadd.f32 %v2138_v32, %v856_v59  ;;  %v2383_v18 = vadd.f32 %v2138_v32, %v857_v42 }
 0x1b8   :  { %v2389_v46 = vadd.f32 %v2138_v32, %v859_v40  ;;  %v2392_v63 = vadd.f32 %v2138_v32, %v860_v21  ;;  %v2395_v41 = vadd.f32 %v2138_v32, %v862_v52  ;;  %v2398_v20 = vadd.f32 %v2138_v32, %v863_v44 }
 0x1b9   :  { %v2401_v59 = vadd.f32 %v2138_v32, %v864_v58  ;;  %v2404_v42 = vadd.f32 %v2138_v32, %v865_v30  ;;  %v2407_v16 = vadd.f32 %v2138_v32, %v866_v53  ;;  %v2410_v40 = vadd.f32 %v2138_v32, %v867_v56 }
 0x1ba   :  { %v2413_v21 = vadd.f32 %v2138_v32, %v868_v17  ;;  %v2416_v52 = vadd.f32 %v2138_v32, %v869_v29  ;;  %v2419_v44 = vadd.f32 %v2138_v32, %v870_v43  ;;  %v2422_v58 = vadd.f32 %v2138_v32, %v871_v25 }
 0x1bb   :  { %v2425_v30 = vadd.f32 %v2138_v32, %v872_v39  ;;  %v2428_v53 = vadd.f32 %v2138_v32, %v873_v36  ;;  %v2431_v56 = vadd.f32 %v2138_v32, %v874_v51  ;;  %v2434_v17 = vadd.f32 %v2138_v32, %v875_v47 }
 0x1bc   :  { %v2437_v29 = vadd.f32 %v2138_v32, %v876_v1  ;;  %v2440_v43 = vadd.f32 %v2138_v32, %v878_v61  ;;  %v2443_v25 = vadd.f32 %v2138_v32, %v879_v15  ;;  %v2446_v39 = vadd.f32 %v2138_v32, %v880_v11 }
 0x1bd   :  { %v2449_v36 = vadd.f32 %v2138_v32, %v881_v33  ;;  %v2452_v51 = vadd.f32 %v2138_v32, %v882_v27  ;;  %v2455_v47 = vadd.f32 %v2138_v32, %v883_v55  ;;  %v2458_v1 = vadd.f32 %v2138_v32, %v884_v50 }
 0x1be   :  { %v2461_v61 = vadd.f32 %v2138_v32, %v885_v5  ;;  %v2464_v15 = vadd.f32 %v2138_v32, %v886_v37  ;;  %v2467_v11 = vadd.f32 %v2138_v32, %v887_v23  ;;  %v2470_v33 = vadd.f32 %v2138_v32, %v888_v22 }
 0x1bf   :  { %v2473_v27 = vadd.f32 %v2138_v32, %v889_v57  ;;  %v2476_v55 = vadd.f32 %v2138_v32, %v890_v6  ;;  %v2479_v50 = vadd.f32 %v2138_v32, %v891_v19  ;;  %v2482_v5 = vadd.f32 %v2138_v32, %v892_v31 }
 0x1c0   :  { %2672 = vst [vmem:[#allocation15_spill] sm:$0xff] %v2470_v33  ;;  %v2485_v37 = vadd.f32 %v2138_v32, %v894_v12  ;;  %v965_v23 = vmax.f32 %v2291_v48, 0.0  ;;  %v966_v22 = vmax.f32 %v2295_v0, 0.0  ;;  %v967_v33 = vmax.f32 %v2299_v14, 0.0  ;;  %v2678_v12 = vld [vmem:[#allocation11_spill] sm:$0xff] }
 0x1c1   :  { %2673 = vst [vmem:[#allocation14_spill] sm:$0xff] %v2473_v27  ;;  %2674 = vst [vmem:[#allocation18_spill] sm:$0xff] %v2476_v55  ;;  %v968_v57 = vmax.f32 %v2303_v26, 0.0  ;;  %v969_v6 = vmax.f32 %v2307_v34, 0.0  ;;  %v970_v55 = vmax.f32 %v2311_v54, 0.0  ;;  %v971_v19 = vmax.f32 %v2315_v45, 0.0 }
 0x1c2   :  { %2675 = vst [vmem:[#allocation16_spill] sm:$0xff] %v2479_v50  ;;  %2676 = vst [vmem:[#allocation22_spill] sm:$0xff] %v2482_v5  ;;  %v972_v31 = vmax.f32 %v2319_v3, 0.0  ;;  %v973_v5 = vmax.f32 %v2323_v7, 0.0  ;;  %v974_v32 = vmax.f32 %v2327_v9, 0.0  ;;  %v975_v48 = vmax.f32 %v2678_v12, 0.0 }
 0x1c3   :  { %2677 = vst [vmem:[#allocation20_spill] sm:$0xff] %v2485_v37  ;;  %v2679_v37 = vld [vmem:[#allocation10_spill] sm:$0xff]  ;;  %v2680_v50 = vld [vmem:[#allocation13_spill] sm:$0xff]  ;;  %v978_v26 = vmax.f32 %v2343_v35, 0.0  ;;  %v980_v34 = vmax.f32 %v2347_v49, 0.0  ;;  %v2681_v27 = vld [vmem:[#allocation12_spill] sm:$0xff] }
 0x1c4   :  { %v976_v0 = vmax.f32 %v2679_v37, 0.0  ;;  %v977_v14 = vmax.f32 %v2680_v50, 0.0  ;;  %v981_v54 = vmax.f32 %v2681_v27, 0.0  ;;  %v982_v45 = vmax.f32 %v2355_v13, 0.0 }
 0x1c5   :  { %v983_v3 = vmax.f32 %v2359_v10, 0.0  ;;  %v984_v7 = vmax.f32 %v2362_v24, 0.0  ;;  %v985_v9 = vmax.f32 %v2365_v38, 0.0  ;;  %v986_v12 = vmax.f32 %v2368_v8, 0.0 }
 0x1c6   :  { %v987_v37 = vmax.f32 %v2371_v62, 0.0  ;;  %v988_v50 = vmax.f32 %v2374_v60, 0.0  ;;  %v989_v35 = vmax.f32 %v2377_v4, 0.0  ;;  %v990_v49 = vmax.f32 %v2380_v28, 0.0 }
 0x1c7   :  { %v991_v27 = vmax.f32 %v2383_v18, 0.0  ;;  %v992_v13 = vmax.f32 %v2386_v2, 0.0  ;;  %v993_v10 = vmax.f32 %v2389_v46, 0.0  ;;  %v994_v24 = vmax.f32 %v2392_v63, 0.0 }
 0x1c8   :  { %v996_v38 = vmax.f32 %v2395_v41, 0.0  ;;  %v997_v8 = vmax.f32 %v2398_v20, 0.0  ;;  %v998_v62 = vmax.f32 %v2401_v59, 0.0  ;;  %v999_v60 = vmax.f32 %v2404_v42, 0.0 }
 0x1c9   :  { %v1000_v4 = vmax.f32 %v2407_v16, 0.0  ;;  %v1001_v28 = vmax.f32 %v2410_v40, 0.0  ;;  %v1002_v18 = vmax.f32 %v2413_v21, 0.0  ;;  %v1003_v2 = vmax.f32 %v2416_v52, 0.0 }
 0x1ca   :  { %v1004_v46 = vmax.f32 %v2419_v44, 0.0  ;;  %v1005_v63 = vmax.f32 %v2422_v58, 0.0  ;;  %v1006_v41 = vmax.f32 %v2425_v30, 0.0  ;;  %v1007_v20 = vmax.f32 %v2428_v53, 0.0 }
 0x1cb   :  { %v1008_v59 = vmax.f32 %v2431_v56, 0.0  ;;  %v1009_v42 = vmax.f32 %v2434_v17, 0.0  ;;  %v1010_v16 = vmax.f32 %v2437_v29, 0.0  ;;  %v1012_v40 = vmax.f32 %v2440_v43, 0.0  ;;  %v2682_v43 = vld [vmem:[#allocation15_spill] sm:$0xff] }
 0x1cc   :  { %v1013_v21 = vmax.f32 %v2443_v25, 0.0  ;;  %v1014_v52 = vmax.f32 %v2446_v39, 0.0  ;;  %v1015_v44 = vmax.f32 %v2449_v36, 0.0  ;;  %v1016_v58 = vmax.f32 %v2452_v51, 0.0  ;;  %v2683_v39 = vld [vmem:[#allocation14_spill] sm:$0xff] }
 0x1cd   :  { %v1017_v30 = vmax.f32 %v2455_v47, 0.0  ;;  %v1018_v53 = vmax.f32 %v2458_v1, 0.0  ;;  %v1019_v56 = vmax.f32 %v2461_v61, 0.0  ;;  %v1020_v17 = vmax.f32 %v2464_v15, 0.0  ;;  %v2684_v51 = vld [vmem:[#allocation18_spill] sm:$0xff]  ;;  %v2685_v1 = vld [vmem:[#allocation16_spill] sm:$0xff] }
 0x1ce   :  { %v1021_v29 = vmax.f32 %v2467_v11, 0.0  ;;  %v1022_v25 = vmax.f32 %v2682_v43, 0.0  ;;  %v1023_v36 = vmax.f32 %v2683_v39, 0.0  ;;  %v1024_v47 = vmax.f32 %v2684_v51, 0.0  ;;  %v2686_v15 = vld [vmem:[#allocation22_spill] sm:$0xff]  ;;  %v2687_v43 = vld [vmem:[#allocation20_spill] sm:$0xff] }
 0x1cf   :  { %v1025_v61 = vmax.f32 %v2685_v1, 0.0  ;;  %v1026_v11 = vmax.f32 %v2686_v15, 0.0  ;;  %v1028_v39 = vmax.f32 %v2687_v43, 0.0  ;;  %v1029_v51 = vmax.f32 %v965_v23, %v981_v54 }
 0x1d0   :  { %v1030_v1 = vmax.f32 %v966_v22, %v982_v45  ;;  %v1031_v15 = vmax.f32 %v967_v33, %v983_v3  ;;  %v1032_v43 = vmax.f32 %v968_v57, %v984_v7  ;;  %v1033_v23 = vmax.f32 %v969_v6, %v985_v9 }
 0x1d1   :  { %v1034_v54 = vmax.f32 %v970_v55, %v986_v12  ;;  %v1035_v22 = vmax.f32 %v971_v19, %v987_v37  ;;  %v1036_v45 = vmax.f32 %v972_v31, %v988_v50  ;;  %v1037_v3 = vmax.f32 %v973_v5, %v989_v35 }
 0x1d2   :  { %v1038_v33 = vmax.f32 %v974_v32, %v990_v49  ;;  %v1039_v7 = vmax.f32 %v975_v48, %v991_v27  ;;  %v1040_v57 = vmax.f32 %v976_v0, %v992_v13  ;;  %v1041_v6 = vmax.f32 %v977_v14, %v993_v10 }
 0x1d3   :  { %v1042_v9 = vmax.f32 %v978_v26, %v994_v24  ;;  %v1044_v12 = vmax.f32 %v980_v34, %v996_v38  ;;  %v1045_v55 = vmax.f32 %v997_v8, %v1013_v21  ;;  %v1046_v19 = vmax.f32 %v998_v62, %v1014_v52 }
 0x1d4   :  { %v1047_v37 = vmax.f32 %v999_v60, %v1015_v44  ;;  %v1048_v31 = vmax.f32 %v1000_v4, %v1016_v58  ;;  %v1049_v50 = vmax.f32 %v1001_v28, %v1017_v30  ;;  %v1050_v5 = vmax.f32 %v1002_v18, %v1018_v53 }
 0x1d5   :  { %v1051_v35 = vmax.f32 %v1003_v2, %v1019_v56  ;;  %v1052_v32 = vmax.f32 %v1004_v46, %v1020_v17  ;;  %v1053_v49 = vmax.f32 %v1005_v63, %v1021_v29  ;;  %v1054_v27 = vmax.f32 %v1006_v41, %v1022_v25 }
 0x1d6   :  { %v1055_v48 = vmax.f32 %v1007_v20, %v1023_v36  ;;  %v1056_v0 = vmax.f32 %v1008_v59, %v1024_v47  ;;  %v1057_v13 = vmax.f32 %v1009_v42, %v1025_v61  ;;  %v1058_v10 = vmax.f32 %v1010_v16, %v1026_v11 }
 0x1d7   :  { %v1060_v14 = vmax.f32 %v1012_v40, %v1028_v39  ;;  %v1061_v24 = vmax.f32 %v1029_v51, %v1045_v55  ;;  %v1062_v26 = vmax.f32 %v1030_v1, %v1046_v19  ;;  %v1063_v34 = vmax.f32 %v1031_v15, %v1047_v37 }
 0x1d8   :  { %v1064_v38 = vmax.f32 %v1032_v43, %v1048_v31  ;;  %v1065_v8 = vmax.f32 %v1033_v23, %v1049_v50  ;;  %v1066_v62 = vmax.f32 %v1034_v54, %v1050_v5  ;;  %v1067_v60 = vmax.f32 %v1035_v22, %v1051_v35 }
 0x1d9   :  { %v1068_v4 = vmax.f32 %v1036_v45, %v1052_v32  ;;  %v1069_v28 = vmax.f32 %v1037_v3, %v1053_v49  ;;  %1077 = vst.msk [vmem:[#allocation2] sm:$0xff] %vm483_vm0, %v1061_v24  ;;  %v1070_v18 = vmax.f32 %v1038_v33, %v1054_v27  ;;  %v1071_v2 = vmax.f32 %v1039_v7, %v1055_v48 }
 0x1da   :  { %v1072_v46 = vmax.f32 %v1040_v57, %v1056_v0  ;;  %v1073_v63 = vmax.f32 %v1041_v6, %v1057_v13  ;;  %1078 = vst.msk [vmem:[#allocation2 + $0x8] sm:$0xff] %vm483_vm0, %v1062_v26  ;;  %1079 = vst.msk [vmem:[#allocation2 + $0x10] sm:$0xff] %vm483_vm0, %v1063_v34  ;;  %v1074_v41 = vmax.f32 %v1042_v9, %v1058_v10 }
 0x1db   :  { %1080 = vst.msk [vmem:[#allocation2 + $0x18] sm:$0xff] %vm483_vm0, %v1064_v38  ;;  %1081 = vst.msk [vmem:[#allocation2 + $0x20] sm:$0xff] %vm483_vm0, %v1065_v8  ;;  %v1076_v20 = vmax.f32 %v1044_v12, %v1060_v14 }
 0x1dc   :  { %1082 = vst.msk [vmem:[#allocation2 + $0x28] sm:$0xff] %vm483_vm0, %v1066_v62  ;;  %1083 = vst.msk [vmem:[#allocation2 + $0x30] sm:$0xff] %vm483_vm0, %v1067_v60 }
 0x1dd   :  { %1084 = vst.msk [vmem:[#allocation2 + $0x38] sm:$0xff] %vm483_vm0, %v1068_v4  ;;  %1085 = vst.msk [vmem:[#allocation2 + $0x40] sm:$0xff] %vm483_vm0, %v1069_v28 }
 0x1de   :  { %1086 = vst.msk [vmem:[#allocation2 + $0x48] sm:$0xff] %vm483_vm0, %v1070_v18  ;;  %1087 = vst.msk [vmem:[#allocation2 + $0x50] sm:$0xff] %vm483_vm0, %v1071_v2 }
 0x1df   :  { %1088 = vst.msk [vmem:[#allocation2 + $0x58] sm:$0xff] %vm483_vm0, %v1072_v46  ;;  %1089 = vst.msk [vmem:[#allocation2 + $0x60] sm:$0xff] %vm483_vm0, %v1073_v63 }
 0x1e0   :  { %1090 = vst.msk [vmem:[#allocation2 + $0x68] sm:$0xff] %vm483_vm0, %v1074_v41  ;;  %1092 = vst.msk [vmem:[#allocation2 + $0x78] sm:$0xff] %vm483_vm0, %v1076_v20 }
 0x1e1   :  { %1381 = shalt.err (!%p1378_p4)
}
 0x1e2   :  { %s1382_s20 = scalar_lea.hbm %s2585_s4, 2048 }
 0x1e3   :  { %p1383_p5 = scmp.ne.s32.totalorder %s2585_s4, %s1382_s20  ;;  %p1386_p6 = scmp.lt.u32.totalorder %s1382_s20, %s2585_s4 }
 0x1e5   :  { %p1388_p7 = pnand %p1386_p6, %p1383_p5 }
 0x1e7   :  { %1391 = shalt.err (!%p1388_p7)
}
 0x1e8   :  { %s1395_s25 = smov 128   ;;  %s1396_s26 = smov 8  }
 0x1e9   :  { %1104 = dma.vmem_to_hbm [thread:$0]  %s2552_s3, 2048, %s2585_s4, [#allocation3], %s1395_s25, %s1395_s25, %s1396_s26  }
 0x1ea   :  { %1392 = dma.done.wait [#allocation3], 2048  }
 0x1eb   :  { %1393 = vsyncadd [#allocation3], 4294965248 }
 0x1ec   :  { %1108 = vsyncpa [#allocation3], 1 }

</bundles_post_ra>
